<compile_context>
chip_gen: v6e
topology: v6e:2x2x1
jax: 0.10.0
libtpu: 0.0.40
codegen_flags: <defaults>
</compile_context>

<pallas_src>
import math

import jax
import jax.numpy as jnp
from jax.experimental import pallas as pl
from jax.experimental.pallas import tpu as pltpu


def _round_up(x, m):
    return (x + m - 1) // m * m


_VMEM_X_BUDGET = 16 * 1024 * 1024   # conservative: fits scoped VMEM on v5e/v6e/v7x


# ----------------------------------------------------------------------------
# get_timestep_embedding (standard DDPM sinusoidal embedding, as used by CAGE)
# ----------------------------------------------------------------------------
def get_timestep_embedding(timesteps, embedding_dim):
    timesteps = jnp.asarray(timesteps, dtype=jnp.float32)
    half_dim = embedding_dim // 2
    emb = math.log(10000.0) / (half_dim - 1)
    emb = jnp.exp(jnp.arange(half_dim, dtype=jnp.float32) * -emb)
    emb = timesteps[:, None] * emb[None, :]
    emb = jnp.concatenate([jnp.sin(emb), jnp.cos(emb)], axis=-1)
    if embedding_dim % 2 == 1:
        emb = jnp.pad(emb, ((0, 0), (0, 1)))
    return emb  # (len(timesteps), embedding_dim)


# ----------------------------------------------------------------------------
# Single fused kernel: streamed encoder pooling + conditional backbone
# ----------------------------------------------------------------------------
def _make_cage_kernel(metas, total_tiles, inv_rows):
    n_keys = len(metas)

    def kernel(*args):
        x_refs = args[:n_keys]
        w_refs = args[n_keys:2 * n_keys]
        (a_ref, t_ref, const_ref, wa_ref, wt_ref, wc_ref,
         b1_ref, w2_ref, b2_ref, o_ref, acc_ref) = args[2 * n_keys:]
        m = pl.program_id(0)

        @pl.when(m == 0)
        def _init():
            acc_ref[...] = jnp.zeros_like(acc_ref)

        # --- streamed pooled encoder: acc += sum_rows(x_tile) @ W_key ---
        for k in range(n_keys):
            mt = metas[k]

            def _accumulate(x_ref=x_refs[k], w_ref=w_refs[k],
                            start=mt["start"], nblk=mt["nblk"], mp=mt["mp"],
                            tm=mt["tm"], din=mt["din"], pack=mt["pack"]):
                x = x_ref[...].astype(jnp.float32)        # (B, tm, pack*din)
                if nblk > 1:
                    # No host-side pad: OOB rows of the edge block are garbage,
                    # so mask them before the reduction (VPU mask, free).
                    rows_valid = mp - (m - start) * tm
                    iota = jax.lax.broadcasted_iota(
                        jnp.int32, (tm, pack * din), 0)
                    x = jnp.where((iota < rows_valid)[None], x, 0.0)
                xsum = jnp.sum(x, axis=1)                 # (B, pack*din)
                if pack > 1:
                    # Fold lane-packed token groups back onto the first din
                    # lanes (XLU roll -> off the DMA/VALU critical path).
                    folded = xsum
                    for p in range(1, pack):
                        folded = folded + pltpu.roll(xsum, shift=p * din, axis=1)
                    xsum = folded[:, :din]
                acc_ref[...] += jnp.dot(xsum, w_ref[...].astype(jnp.float32),
                                        preferred_element_type=jnp.float32)

            pl.when((m >= mt["start"]) & (m < mt["start"] + mt["nblk"]))(_accumulate)

        # --- last grid step: finish mean-pool + conditional backbone ---
        @pl.when(m == total_tiles - 1)
        def _finalize():
            cond = (acc_ref[...] + const_ref[...]) * inv_rows          # (B, D)
            h = (jnp.dot(a_ref[...], wa_ref[...], preferred_element_type=jnp.float32)
                 + jnp.dot(t_ref[...], wt_ref[...], preferred_element_type=jnp.float32)
                 + jnp.dot(cond, wc_ref[...], preferred_element_type=jnp.float32)
                 + b1_ref[...])
            h = jnp.maximum(h, 0.0)
            o_ref[...] = (jnp.dot(h, w2_ref[...], preferred_element_type=jnp.float32)
                          + b2_ref[...]).astype(o_ref.dtype)

    return kernel


def _x_index_map(start, nblk):
    # Clamped block index: constant outside this key's active tile range, so
    # Pallas issues no redundant DMA while other keys stream.
    def imap(m):
        mb = jnp.maximum(jnp.minimum(m - start, nblk - 1), 0)
        return (0, mb, 0)
    return imap


# ----------------------------------------------------------------------------
# CAGE forward (thin JAX glue + one fused Pallas call)
# ----------------------------------------------------------------------------
def cage_forward(params, noisy_actions, timesteps, obs_dict, *, max_tile_rows=None):
    """Reproduces CAGE.forward(noisy_actions, timesteps, obs_dict=obs_dict)."""
    D = params["obs_dim"]
    obs_keys = sorted(obs_dict.keys())
    B, Ta, Da = noisy_actions.shape
    AD = Ta * Da
    bb = params["backbone"]
    H = bb["Wa"].shape[1]

    time_tab = params["obs_time_emb"].reshape(-1, D)     # (obs_horizon, D)
    type_tab = params["obs_type_emb"].reshape(-1, D)     # (obs_num, D)

    # ---- static per-key schedule (all shapes are trace-time constants) ----
    prelim = []
    x_block_bytes_per_row = 0
    for key in obs_keys:
        obs = obs_dict[key]                              # (B, N, T, tokens, Din)
        _, N, T, Tok, Din = obs.shape
        rows = N * T * Tok
        pack = 1
        if Din <= 64 and 128 % Din == 0 and rows % (128 // Din) == 0:
            pack = 128 // Din                            # pack tokens -> dense 128 lanes
        mp = rows // pack
        prelim.append((key, obs, N, T, Tok, Din, rows, pack, mp))
        # double-buffered x-block footprint per packed row (lane-padded)
        x_block_bytes_per_row += 2 * B * _round_up(pack * Din, 128) * obs.dtype.itemsize

    tm_budget = max(8, min(2048,
                           (_VMEM_X_BUDGET // max(x_block_bytes_per_row, 1)) // 8 * 8))
    if max_tile_rows is not None:
        tm_budget = max(8, min(tm_budget, (max_tile_rows // 8) * 8))

    # cond = ( sum_k sum_rows(x_k @ W_k)                       [Pallas, streamed]
    #        + sum_k rows_k * b_k                              [analytic]
    #        + Tok_k * (N_k * sum_t time_emb + T_k * sum_n type_emb) ) / L
    xs, ws, metas = [], [], []
    const = jnp.zeros((D,), jnp.float32)
    total_rows, type_idx, start = 0, 0, 0
    for key, obs, N, T, Tok, Din, rows, pack, mp in prelim:
        xs.append(obs.reshape(B, mp, pack * Din))        # contiguous reshape, no pad copy
        ws.append(params["enc"][key]["W"])
        if mp <= tm_budget:
            tm, nblk = mp, 1                             # full-dim block is always legal
        else:
            tm = tm_budget                               # multiple of 8
            nblk = (mp + tm - 1) // tm                   # tail tile masked in-kernel
        metas.append(dict(start=start, nblk=nblk, mp=mp, tm=tm, din=Din, pack=pack))
        start += nblk
        b = params["enc"][key]["b"].reshape(D)
        const = const + rows * b
        const = const + Tok * (N * jnp.sum(time_tab[:T], axis=0)
                               + T * jnp.sum(type_tab[type_idx:type_idx + N], axis=0))
        total_rows += rows
        type_idx += N
    total_tiles = start
    inv_rows = 1.0 / float(total_rows)
    # TODO(synk): this pooling fusion is valid because perceiver is None and the
    # backbone only consumes the mean-pooled cond; a Perceiver stack would need
    # the materialized obs_emb tokens instead.

    a_flat = noisy_actions.reshape(B, AD).astype(jnp.float32)
    t_emb = get_timestep_embedding(timesteps, D)         # (B, D)
    const2 = const.reshape(1, D)

    # ---- specs ----
    in_specs = []
    for x, mt in zip(xs, metas):
        in_specs.append(pl.BlockSpec((B, mt["tm"], x.shape[-1]),
                                     _x_index_map(mt["start"], mt["nblk"])))
    for w in ws:
        in_specs.append(pl.BlockSpec(w.shape, lambda m: (0, 0)))
    small = (a_flat, t_emb, const2, bb["Wa"], bb["Wt"], bb["Wc"],
             bb["b1"], bb["W2"], bb["b2"])
    for arr in small:
        in_specs.append(pl.BlockSpec(arr.shape, lambda m: (0, 0)))

    # advisory cost estimate so XLA overlaps the tiny surrounding ops
    bytes_accessed = sum(int(x.size) * x.dtype.itemsize for x in xs)
    bytes_accessed += sum(int(w.size) * w.dtype.itemsize for w in ws)
    bytes_accessed += sum(int(a.size) * a.dtype.itemsize for a in small) + B * AD * 4
    flops = sum(2 * B * r * d + 2 * B * d * D * mt["nblk"]
                for (_, _, _, _, _, d, r, _, _), mt in zip(prelim, metas))
    flops += 2 * B * (AD + 2 * D) * H + 2 * B * H * AD

    kernel = _make_cage_kernel(metas, total_tiles, inv_rows)
    out = pl.pallas_call(
        kernel,
        out_shape=jax.ShapeDtypeStruct((B, AD), jnp.float32),
        grid=(total_tiles,),
        in_specs=in_specs,
        out_specs=pl.BlockSpec((B, AD), lambda m: (0, 0)),
        scratch_shapes=[pltpu.VMEM((B, D), jnp.float32)],
        compiler_params=pltpu.CompilerParams(
            # single running accumulator -> sequential grid.
            # TODO(synk): on v7x a (2, tiles//2) grid with a leading "parallel"
            # axis and two partial accumulators would split the HBM stream
            # across both TensorCores.
            dimension_semantics=("arbitrary",),
            vmem_limit_bytes=32 * 1024 * 1024),
        cost_estimate=pl.CostEstimate(flops=int(flops), transcendentals=0,
                                      bytes_accessed=int(bytes_accessed)),
    )(*xs, *ws, *small)
    return out.reshape(B, Ta, Da)


# Pure-JAX reference (materializes obs_emb exactly like the PyTorch module).
def cage_forward_ref(params, noisy_actions, timesteps, obs_dict):
    D = params["obs_dim"]
    all_obs = []
    type_idx = 0
    for key in sorted(obs_dict.keys()):
        obs = obs_dict[key]
        B, N, T, Tok, Din = obs.shape
        w, b = params["enc"][key]["W"], params["enc"][key]["b"]
        enc = obs.reshape(-1, Din) @ w + b
        enc = enc.reshape(B, N, T, Tok, D)
        emb = (params["obs_time_emb"]
               + params["obs_type_emb"][:, type_idx:type_idx + N])
        all_obs.append(enc + emb)
        type_idx += N
    obs_emb = jnp.concatenate(all_obs, axis=1)
    B, Ta, Da = noisy_actions.shape
    a_flat = noisy_actions.reshape(B, Ta * Da)
    t_emb = get_timestep_embedding(timesteps, D)
    cond_pool = jnp.mean(obs_emb.reshape(B, -1, D), axis=1)
    bb = params["backbone"]
    h = jnp.maximum(a_flat @ bb["Wa"] + t_emb @ bb["Wt"]
                    + cond_pool @ bb["Wc"] + bb["b1"], 0.0)
    return (h @ bb["W2"] + bb["b2"]).reshape(B, Ta, Da)


# ----------------------------------------------------------------------------
# Deterministic parameter construction
# ----------------------------------------------------------------------------
def make_params(key, *, obs_dim, obs_horizon, obs_num, d_in, act_flat, hidden,
                obs_keys):
    keys = jax.random.split(key, 2 + 4 * len(obs_keys) + 8)
    it = iter(keys)
    params = {
        "obs_dim": obs_dim,
        # nn.Parameter(get_timestep_embedding(arange(T), D).reshape(1,1,T,1,D))
        "obs_time_emb": get_timestep_embedding(
            jnp.arange(obs_horizon), obs_dim).reshape(1, 1, obs_horizon, 1,
                                                      obs_dim),
        # nn.Parameter(torch.zeros(1, obs_num, 1, 1, obs_dim))
        "obs_type_emb": jnp.zeros((1, obs_num, 1, 1, obs_dim), jnp.float32),
        "enc": {},
    }
    for k in obs_keys:
        params["enc"][k] = {
            "W": jax.random.normal(next(it), (d_in, obs_dim), jnp.float32) * 0.02,
            "b": jax.random.normal(next(it), (1, obs_dim), jnp.float32) * 0.02,
        }
    params["backbone"] = {
        "Wa": jax.random.normal(next(it), (act_flat, hidden), jnp.float32) * 0.02,
        "Wt": jax.random.normal(next(it), (obs_dim, hidden), jnp.float32) * 0.02,
        "Wc": jax.random.normal(next(it), (obs_dim, hidden), jnp.float32) * 0.02,
        "b1": jax.random.normal(next(it), (1, hidden), jnp.float32) * 0.02,
        "W2": jax.random.normal(next(it), (hidden, act_flat), jnp.float32) * 0.02,
        "b2": jax.random.normal(next(it), (1, act_flat), jnp.float32) * 0.02,
    }
    return params


if __name__ == "__main__":
    B, obs_horizon, obs_dim = 2, 2, 128
    tokens, d_in = 20, 64
    Ta, Da, hidden = 8, 16, 128          # Ta*Da = 128 -> lane-dense output
    obs_keys = ["rgb", "state"]          # two obs types, N=1 each -> obs_num=2
    obs_num = len(obs_keys)

    key = jax.random.PRNGKey(0)
    k_par, k_type, k_rgb, k_state, k_act = jax.random.split(key, 5)

    params = make_params(k_par, obs_dim=obs_dim, obs_horizon=obs_horizon,
                         obs_num=obs_num, d_in=d_in, act_flat=Ta * Da,
                         hidden=hidden, obs_keys=obs_keys)
    # Module init is zeros for obs_type_emb (learnable); use non-zero values in
    # the test so the type-embedding path is actually exercised by the check.
    params["obs_type_emb"] = 0.1 * jax.random.normal(
        k_type, (1, obs_num, 1, 1, obs_dim), jnp.float32)

    obs_dict = {
        "rgb": jax.random.normal(k_rgb, (B, 1, obs_horizon, tokens, d_in),
                                 jnp.float32),
        "state": jax.random.normal(k_state, (B, 1, obs_horizon, tokens, d_in),
                                   jnp.float32),
    }
    noisy_actions = jax.random.normal(k_act, (B, Ta, Da), jnp.float32)
    timesteps = jnp.array([5, 17], dtype=jnp.int32)

    ref = cage_forward_ref(params, noisy_actions, timesteps, obs_dict)

    # 1) default tiling: one tile per obs key (whole stream resident per step)
    out = cage_forward(params, noisy_actions, timesteps, obs_dict)
    out = jax.block_until_ready(out)
    assert out.shape == (B, Ta, Da)
    assert jnp.allclose(out, ref, atol=1e-4, rtol=1e-4)

    # 2) forced small tiles: multi-tile accumulation, clamped per-key index
    #    maps, and in-kernel masking of the (garbage) tail-tile rows.
    out_tiled = cage_forward(params, noisy_actions, timesteps, obs_dict,
                             max_tile_rows=8)
    out_tiled = jax.block_until_ready(out_tiled)
    assert jnp.allclose(out_tiled, ref, atol=1e-4, rtol=1e-4)

    # TODO(synk): perceiver submodule is configured as None (supported by the
    # module); a full Perceiver cross-attention stack is out of scope here.
    print("KERNEL_OK")
</pallas_src>

<mosaic_0001>
module attributes {stable_mosaic.version = 11 : i64} {
  func.func @kernel(%arg0: i32, %arg1: memref<2x20x128xf32, #tpu.memory_space<vmem>>, %arg2: memref<2x20x128xf32, #tpu.memory_space<vmem>>, %arg3: memref<64x128xf32, #tpu.memory_space<vmem>>, %arg4: memref<64x128xf32, #tpu.memory_space<vmem>>, %arg5: memref<2x128xf32, #tpu.memory_space<vmem>>, %arg6: memref<2x128xf32, #tpu.memory_space<vmem>>, %arg7: memref<1x128xf32, #tpu.memory_space<vmem>>, %arg8: memref<128x128xf32, #tpu.memory_space<vmem>>, %arg9: memref<128x128xf32, #tpu.memory_space<vmem>>, %arg10: memref<128x128xf32, #tpu.memory_space<vmem>>, %arg11: memref<1x128xf32, #tpu.memory_space<vmem>>, %arg12: memref<128x128xf32, #tpu.memory_space<vmem>>, %arg13: memref<1x128xf32, #tpu.memory_space<vmem>>, %arg14: memref<2x128xf32, #tpu.memory_space<vmem>>, %arg15: memref<2x128xf32, #tpu.memory_space<vmem>>) attributes {dimension_semantics = [#tpu.dimension_semantics<arbitrary>], iteration_bounds = array<i64: 2>, scalar_prefetch = 0 : i64, scratch_operands = 1 : i64, tpu.core_type = #tpu.core_type<tc>, window_params = [{transform_indices = @transform_0, window_bounds = array<i64: 2, 20, 128>}, {transform_indices = @transform_1, window_bounds = array<i64: 2, 20, 128>}, {pipeline_mode = #tpu.pipeline_mode<synchronous>, transform_indices = @transform_2, window_bounds = array<i64: 64, 128>}, {pipeline_mode = #tpu.pipeline_mode<synchronous>, transform_indices = @transform_3, window_bounds = array<i64: 64, 128>}, {pipeline_mode = #tpu.pipeline_mode<synchronous>, transform_indices = @transform_4, window_bounds = array<i64: 2, 128>}, {pipeline_mode = #tpu.pipeline_mode<synchronous>, transform_indices = @transform_5, window_bounds = array<i64: 2, 128>}, {pipeline_mode = #tpu.pipeline_mode<synchronous>, transform_indices = @transform_6, window_bounds = array<i64: 1, 128>}, {pipeline_mode = #tpu.pipeline_mode<synchronous>, transform_indices = @transform_7, window_bounds = array<i64: 128, 128>}, {pipeline_mode = #tpu.pipeline_mode<synchronous>, transform_indices = @transform_8, window_bounds = array<i64: 128, 128>}, {pipeline_mode = #tpu.pipeline_mode<synchronous>, transform_indices = @transform_9, window_bounds = array<i64: 128, 128>}, {pipeline_mode = #tpu.pipeline_mode<synchronous>, transform_indices = @transform_10, window_bounds = array<i64: 1, 128>}, {pipeline_mode = #tpu.pipeline_mode<synchronous>, transform_indices = @transform_11, window_bounds = array<i64: 128, 128>}, {pipeline_mode = #tpu.pipeline_mode<synchronous>, transform_indices = @transform_12, window_bounds = array<i64: 1, 128>}, {pipeline_mode = #tpu.pipeline_mode<synchronous>, transform_indices = @transform_13, window_bounds = array<i64: 2, 128>}]} {
    %c0_i32 = arith.constant 0 : i32
    %0 = arith.cmpi eq, %arg0, %c0_i32 : i32
    %1 = arith.extui %0 : i1 to i32
    %c0_i32_0 = arith.constant 0 : i32
    %2 = arith.cmpi ne, %1, %c0_i32_0 : i32
    scf.if %2 {
      %cst = arith.constant 0.000000e+00 : f32
      %16 = vector.broadcast %cst : f32 to vector<2x128xf32>
      %c0 = arith.constant 0 : index
      %c0_7 = arith.constant 0 : index
      %17 = vector.load %arg15[%c0, %c0_7] : memref<2x128xf32, #tpu.memory_space<vmem>>, vector<2x128xf32>
      tpu.vector_store %arg15[%c0, %c0_7], %16 {strides = array<i32>} : memref<2x128xf32, #tpu.memory_space<vmem>>, vector<2x128xf32>,
    } else {
    }
    %c0_i32_1 = arith.constant 0 : i32
    %3 = arith.cmpi sge, %arg0, %c0_i32_1 : i32
    %c1_i32 = arith.constant 1 : i32
    %4 = arith.cmpi slt, %arg0, %c1_i32 : i32
    %5 = arith.andi %3, %4 : i1
    %6 = arith.extui %5 : i1 to i32
    %c0_i32_2 = arith.constant 0 : i32
    %7 = arith.cmpi ne, %6, %c0_i32_2 : i32
    scf.if %7 {
      %c0 = arith.constant 0 : index
      %c0_7 = arith.constant 0 : index
      %c0_8 = arith.constant 0 : index
      %16 = vector.load %arg1[%c0, %c0_7, %c0_8] : memref<2x20x128xf32, #tpu.memory_space<vmem>>, vector<2x20x128xf32>
      %cst = arith.constant dense<0.000000e+00> : vector<2x128xf32>
      %17 = vector.multi_reduction <add>, %16, %cst [1] : vector<2x20x128xf32> to vector<2x128xf32>
      %c64_i32 = arith.constant 64 : i32
      %18 = tpu.dynamic_rotate %17 by %c64_i32 dim 1 : vector<2x128xf32>, i32 -> vector<2x128xf32>
      %19 = arith.addf %17, %18 : vector<2x128xf32>
      %20 = vector.extract_strided_slice %19 {offsets = [0, 0], sizes = [2, 64], strides = [1, 1]} : vector<2x128xf32> to vector<2x64xf32>
      %c0_9 = arith.constant 0 : index
      %c0_10 = arith.constant 0 : index
      %21 = vector.load %arg15[%c0_9, %c0_10] : memref<2x128xf32, #tpu.memory_space<vmem>>, vector<2x128xf32>
      %c0_11 = arith.constant 0 : index
      %c0_12 = arith.constant 0 : index
      %22 = vector.load %arg3[%c0_11, %c0_12] : memref<64x128xf32, #tpu.memory_space<vmem>>, vector<64x128xf32>
      %cst_13 = arith.constant dense<0.000000e+00> : vector<2x128xf32>
      %23 = tpu.matmul %20, %22, %cst_13 {dimension_numbers = #tpu.dot_dimension_numbers<[1], [0], [0], [1], [0, 0, 1, 1], [], []>} : vector<2x64xf32>, vector<64x128xf32>, vector<2x128xf32> -> vector<2x128xf32>
      %24 = arith.addf %21, %23 : vector<2x128xf32>
      %c0_14 = arith.constant 0 : index
      %c0_15 = arith.constant 0 : index
      %25 = vector.load %arg15[%c0_14, %c0_15] : memref<2x128xf32, #tpu.memory_space<vmem>>, vector<2x128xf32>
      tpu.vector_store %arg15[%c0_14, %c0_15], %24 {strides = array<i32>} : memref<2x128xf32, #tpu.memory_space<vmem>>, vector<2x128xf32>,
    } else {
    }
    %c1_i32_3 = arith.constant 1 : i32
    %8 = arith.cmpi sge, %arg0, %c1_i32_3 : i32
    %c2_i32 = arith.constant 2 : i32
    %9 = arith.cmpi slt, %arg0, %c2_i32 : i32
    %10 = arith.andi %8, %9 : i1
    %11 = arith.extui %10 : i1 to i32
    %c0_i32_4 = arith.constant 0 : i32
    %12 = arith.cmpi ne, %11, %c0_i32_4 : i32
    scf.if %12 {
      %c0 = arith.constant 0 : index
      %c0_7 = arith.constant 0 : index
      %c0_8 = arith.constant 0 : index
      %16 = vector.load %arg2[%c0, %c0_7, %c0_8] : memref<2x20x128xf32, #tpu.memory_space<vmem>>, vector<2x20x128xf32>
      %cst = arith.constant dense<0.000000e+00> : vector<2x128xf32>
      %17 = vector.multi_reduction <add>, %16, %cst [1] : vector<2x20x128xf32> to vector<2x128xf32>
      %c64_i32 = arith.constant 64 : i32
      %18 = tpu.dynamic_rotate %17 by %c64_i32 dim 1 : vector<2x128xf32>, i32 -> vector<2x128xf32>
      %19 = arith.addf %17, %18 : vector<2x128xf32>
      %20 = vector.extract_strided_slice %19 {offsets = [0, 0], sizes = [2, 64], strides = [1, 1]} : vector<2x128xf32> to vector<2x64xf32>
      %c0_9 = arith.constant 0 : index
      %c0_10 = arith.constant 0 : index
      %21 = vector.load %arg15[%c0_9, %c0_10] : memref<2x128xf32, #tpu.memory_space<vmem>>, vector<2x128xf32>
      %c0_11 = arith.constant 0 : index
      %c0_12 = arith.constant 0 : index
      %22 = vector.load %arg4[%c0_11, %c0_12] : memref<64x128xf32, #tpu.memory_space<vmem>>, vector<64x128xf32>
      %cst_13 = arith.constant dense<0.000000e+00> : vector<2x128xf32>
      %23 = tpu.matmul %20, %22, %cst_13 {dimension_numbers = #tpu.dot_dimension_numbers<[1], [0], [0], [1], [0, 0, 1, 1], [], []>} : vector<2x64xf32>, vector<64x128xf32>, vector<2x128xf32> -> vector<2x128xf32>
      %24 = arith.addf %21, %23 : vector<2x128xf32>
      %c0_14 = arith.constant 0 : index
      %c0_15 = arith.constant 0 : index
      %25 = vector.load %arg15[%c0_14, %c0_15] : memref<2x128xf32, #tpu.memory_space<vmem>>, vector<2x128xf32>
      tpu.vector_store %arg15[%c0_14, %c0_15], %24 {strides = array<i32>} : memref<2x128xf32, #tpu.memory_space<vmem>>, vector<2x128xf32>,
    } else {
    }
    %c1_i32_5 = arith.constant 1 : i32
    %13 = arith.cmpi eq, %arg0, %c1_i32_5 : i32
    %14 = arith.extui %13 : i1 to i32
    %c0_i32_6 = arith.constant 0 : i32
    %15 = arith.cmpi ne, %14, %c0_i32_6 : i32
    scf.if %15 {
      %c0 = arith.constant 0 : index
      %c0_7 = arith.constant 0 : index
      %16 = vector.load %arg15[%c0, %c0_7] : memref<2x128xf32, #tpu.memory_space<vmem>>, vector<2x128xf32>
      %c0_8 = arith.constant 0 : index
      %c0_9 = arith.constant 0 : index
      %17 = vector.load %arg7[%c0_8, %c0_9] : memref<1x128xf32, #tpu.memory_space<vmem>>, vector<1x128xf32>
      %18 = vector.broadcast %17 : vector<1x128xf32> to vector<2x128xf32>
      %19 = arith.addf %16, %18 : vector<2x128xf32>
      %cst = arith.constant 1.250000e-02 : f32
      %20 = vector.broadcast %cst : f32 to vector<2x128xf32>
      %21 = arith.mulf %19, %20 : vector<2x128xf32>
      %c0_10 = arith.constant 0 : index
      %c0_11 = arith.constant 0 : index
      %22 = vector.load %arg5[%c0_10, %c0_11] : memref<2x128xf32, #tpu.memory_space<vmem>>, vector<2x128xf32>
      %c0_12 = arith.constant 0 : index
      %c0_13 = arith.constant 0 : index
      %23 = vector.load %arg8[%c0_12, %c0_13] : memref<128x128xf32, #tpu.memory_space<vmem>>, vector<128x128xf32>
      %cst_14 = arith.constant dense<0.000000e+00> : vector<2x128xf32>
      %24 = tpu.matmul %22, %23, %cst_14 {dimension_numbers = #tpu.dot_dimension_numbers<[1], [0], [0], [1], [0, 0, 1, 1], [], []>} : vector<2x128xf32>, vector<128x128xf32>, vector<2x128xf32> -> vector<2x128xf32>
      %c0_15 = arith.constant 0 : index
      %c0_16 = arith.constant 0 : index
      %25 = vector.load %arg6[%c0_15, %c0_16] : memref<2x128xf32, #tpu.memory_space<vmem>>, vector<2x128xf32>
      %c0_17 = arith.constant 0 : index
      %c0_18 = arith.constant 0 : index
      %26 = vector.load %arg9[%c0_17, %c0_18] : memref<128x128xf32, #tpu.memory_space<vmem>>, vector<128x128xf32>
      %cst_19 = arith.constant dense<0.000000e+00> : vector<2x128xf32>
      %27 = tpu.matmul %25, %26, %cst_19 {dimension_numbers = #tpu.dot_dimension_numbers<[1], [0], [0], [1], [0, 0, 1, 1], [], []>} : vector<2x128xf32>, vector<128x128xf32>, vector<2x128xf32> -> vector<2x128xf32>
      %28 = arith.addf %24, %27 : vector<2x128xf32>
      %c0_20 = arith.constant 0 : index
      %c0_21 = arith.constant 0 : index
      %29 = vector.load %arg10[%c0_20, %c0_21] : memref<128x128xf32, #tpu.memory_space<vmem>>, vector<128x128xf32>
      %cst_22 = arith.constant dense<0.000000e+00> : vector<2x128xf32>
      %30 = tpu.matmul %21, %29, %cst_22 {dimension_numbers = #tpu.dot_dimension_numbers<[1], [0], [0], [1], [0, 0, 1, 1], [], []>} : vector<2x128xf32>, vector<128x128xf32>, vector<2x128xf32> -> vector<2x128xf32>
      %31 = arith.addf %28, %30 : vector<2x128xf32>
      %c0_23 = arith.constant 0 : index
      %c0_24 = arith.constant 0 : index
      %32 = vector.load %arg11[%c0_23, %c0_24] : memref<1x128xf32, #tpu.memory_space<vmem>>, vector<1x128xf32>
      %33 = vector.broadcast %32 : vector<1x128xf32> to vector<2x128xf32>
      %34 = arith.addf %31, %33 : vector<2x128xf32>
      %cst_25 = arith.constant 0.000000e+00 : f32
      %35 = vector.broadcast %cst_25 : f32 to vector<2x128xf32>
      %36 = arith.maximumf %34, %35 : vector<2x128xf32>
      %c0_26 = arith.constant 0 : index
      %c0_27 = arith.constant 0 : index
      %37 = vector.load %arg12[%c0_26, %c0_27] : memref<128x128xf32, #tpu.memory_space<vmem>>, vector<128x128xf32>
      %cst_28 = arith.constant dense<0.000000e+00> : vector<2x128xf32>
      %38 = tpu.matmul %36, %37, %cst_28 {dimension_numbers = #tpu.dot_dimension_numbers<[1], [0], [0], [1], [0, 0, 1, 1], [], []>} : vector<2x128xf32>, vector<128x128xf32>, vector<2x128xf32> -> vector<2x128xf32>
      %c0_29 = arith.constant 0 : index
      %c0_30 = arith.constant 0 : index
      %39 = vector.load %arg13[%c0_29, %c0_30] : memref<1x128xf32, #tpu.memory_space<vmem>>, vector<1x128xf32>
      %40 = vector.broadcast %39 : vector<1x128xf32> to vector<2x128xf32>
      %41 = arith.addf %38, %40 : vector<2x128xf32>
      %c0_31 = arith.constant 0 : index
      %c0_32 = arith.constant 0 : index
      %42 = vector.load %arg14[%c0_31, %c0_32] : memref<2x128xf32, #tpu.memory_space<vmem>>, vector<2x128xf32>
      tpu.vector_store %arg14[%c0_31, %c0_32], %41 {strides = array<i32>} : memref<2x128xf32, #tpu.memory_space<vmem>>, vector<2x128xf32>,
    } else {
    }
    return
  }
  func.func @transform_0(%arg0: i32) -> (i32, i32, i32) {
    %c0_i32 = arith.constant 0 : i32
    %0 = arith.subi %arg0, %c0_i32 : i32
    %c0_i32_0 = arith.constant 0 : i32
    %1 = arith.minsi %0, %c0_i32_0 : i32
    %c0_i32_1 = arith.constant 0 : i32
    %2 = arith.maxsi %1, %c0_i32_1 : i32
    %c0_i32_2 = arith.constant 0 : i32
    %c0_i32_3 = arith.constant 0 : i32
    %c0_i32_4 = arith.constant 0 : i32
    return %c0_i32_2, %2, %c0_i32_3 : i32, i32, i32
  }
  func.func @transform_1(%arg0: i32) -> (i32, i32, i32) {
    %c1_i32 = arith.constant 1 : i32
    %0 = arith.subi %arg0, %c1_i32 : i32
    %c0_i32 = arith.constant 0 : i32
    %1 = arith.minsi %0, %c0_i32 : i32
    %c0_i32_0 = arith.constant 0 : i32
    %2 = arith.maxsi %1, %c0_i32_0 : i32
    %c0_i32_1 = arith.constant 0 : i32
    %c0_i32_2 = arith.constant 0 : i32
    %c0_i32_3 = arith.constant 0 : i32
    return %c0_i32_1, %2, %c0_i32_2 : i32, i32, i32
  }
  func.func @transform_2(%arg0: i32) -> (i32, i32) {
    %c0_i32 = arith.constant 0 : i32
    %c0_i32_0 = arith.constant 0 : i32
    %c0_i32_1 = arith.constant 0 : i32
    return %c0_i32, %c0_i32_0 : i32, i32
  }
  func.func @transform_3(%arg0: i32) -> (i32, i32) {
    %c0_i32 = arith.constant 0 : i32
    %c0_i32_0 = arith.constant 0 : i32
    %c0_i32_1 = arith.constant 0 : i32
    return %c0_i32, %c0_i32_0 : i32, i32
  }
  func.func @transform_4(%arg0: i32) -> (i32, i32) {
    %c0_i32 = arith.constant 0 : i32
    %c0_i32_0 = arith.constant 0 : i32
    %c0_i32_1 = arith.constant 0 : i32
    return %c0_i32, %c0_i32_0 : i32, i32
  }
  func.func @transform_5(%arg0: i32) -> (i32, i32) {
    %c0_i32 = arith.constant 0 : i32
    %c0_i32_0 = arith.constant 0 : i32
    %c0_i32_1 = arith.constant 0 : i32
    return %c0_i32, %c0_i32_0 : i32, i32
  }
  func.func @transform_6(%arg0: i32) -> (i32, i32) {
    %c0_i32 = arith.constant 0 : i32
    %c0_i32_0 = arith.constant 0 : i32
    %c0_i32_1 = arith.constant 0 : i32
    return %c0_i32, %c0_i32_0 : i32, i32
  }
  func.func @transform_7(%arg0: i32) -> (i32, i32) {
    %c0_i32 = arith.constant 0 : i32
    %c0_i32_0 = arith.constant 0 : i32
    %c0_i32_1 = arith.constant 0 : i32
    return %c0_i32, %c0_i32_0 : i32, i32
  }
  func.func @transform_8(%arg0: i32) -> (i32, i32) {
    %c0_i32 = arith.constant 0 : i32
    %c0_i32_0 = arith.constant 0 : i32
    %c0_i32_1 = arith.constant 0 : i32
    return %c0_i32, %c0_i32_0 : i32, i32
  }
  func.func @transform_9(%arg0: i32) -> (i32, i32) {
    %c0_i32 = arith.constant 0 : i32
    %c0_i32_0 = arith.constant 0 : i32
    %c0_i32_1 = arith.constant 0 : i32
    return %c0_i32, %c0_i32_0 : i32, i32
  }
  func.func @transform_10(%arg0: i32) -> (i32, i32) {
    %c0_i32 = arith.constant 0 : i32
    %c0_i32_0 = arith.constant 0 : i32
    %c0_i32_1 = arith.constant 0 : i32
    return %c0_i32, %c0_i32_0 : i32, i32
  }
  func.func @transform_11(%arg0: i32) -> (i32, i32) {
    %c0_i32 = arith.constant 0 : i32
    %c0_i32_0 = arith.constant 0 : i32
    %c0_i32_1 = arith.constant 0 : i32
    return %c0_i32, %c0_i32_0 : i32, i32
  }
  func.func @transform_12(%arg0: i32) -> (i32, i32) {
    %c0_i32 = arith.constant 0 : i32
    %c0_i32_0 = arith.constant 0 : i32
    %c0_i32_1 = arith.constant 0 : i32
    return %c0_i32, %c0_i32_0 : i32, i32
  }
  func.func @transform_13(%arg0: i32) -> (i32, i32) {
    %c0_i32 = arith.constant 0 : i32
    %c0_i32_0 = arith.constant 0 : i32
    %c0_i32_1 = arith.constant 0 : i32
    return %c0_i32, %c0_i32_0 : i32, i32
  }
}

</mosaic_0001>

<bundles_post_ra>
// kernel: tpu_custom_call.1
= control target key start
LH: loop header
LB: loop body
LE: loop exit
PB: predicated region body
PF: predicated region fallthrough
CT: control target
= control target key end

     0   :  { %18 = vsyncpa [#allocation4], 0  ;;  %s2316_s0 = inlined_call_operand.vmem [shape: f32[2,20,128], index: 0, kind: input, shape index: {}]   ;;  %s2317_s1 = inlined_call_operand.vmem [shape: f32[2,20,128], index: 1, kind: input, shape index: {}]   ;;  %s2318_s2 = inlined_call_operand.hbm [shape: f32[64,128], index: 2, kind: input, shape index: {}]   ;;  %s2319_s3 = inlined_call_operand.hbm [shape: f32[64,128], index: 3, kind: input, shape index: {}]   ;;  %s2320_s4 = inlined_call_operand.vmem [shape: f32[2,128], index: 4, kind: input, shape index: {}]   ;;  %s2321_s5 = inlined_call_operand.vmem [shape: f32[2,128], index: 5, kind: input, shape index: {}]   ;;  %s2322_s6 = inlined_call_operand.vmem [shape: f32[1,128], index: 6, kind: input, shape index: {}]   ;;  %s2323_s7 = inlined_call_operand.vmem [shape: f32[128,128], index: 7, kind: input, shape index: {}]   ;;  %s2324_s8 = inlined_call_operand.hbm [shape: f32[128,128], index: 8, kind: input, shape index: {}]   ;;  %s2325_s9 = inlined_call_operand.hbm [shape: f32[128,128], index: 9, kind: input, shape index: {}]   ;;  %s2326_s10 = inlined_call_operand.vmem [shape: f32[1,128], index: 10, kind: input, shape index: {}]   ;;  %s2327_s11 = inlined_call_operand.hbm [shape: f32[128,128], index: 11, kind: input, shape index: {}]   ;;  %s2328_s12 = inlined_call_operand.vmem [shape: f32[1,128], index: 12, kind: input, shape index: {}]   ;;  %s2329_s13 = inlined_call_operand.hbm [shape: f32[2,128], index: 13, kind: output, shape index: {}]  }
   0x1   :  { %19 = vsyncpa [#allocation7], 0 }
   0x2   :  { %20 = vsyncpa [#allocation10], 0 }
   0x3   :  { %21 = vsyncpa [#allocation5], 0  ;;  %s2008_s25 = smov 0  }
   0x4 LB: > { %s2014_s26 = sadd.s32 4294967295, %s1919_s25   ;;  %p1365_p0 = scmp.ge.s32.totalorder %s1919_s25, 1  ;;  %s1919_s25 = sphi %s2008_s25, %s27_s25  }
   0x5   : > { %p354_p1 = scmp.lt.s32.totalorder %s1919_s25, 3  ;;  %p1366_p2 = scmp.ne.s32.totalorder %s2014_s26, 0 }
   0x6   : > { %p1706_p3 = scmp.eq.s32.totalorder %s2014_s26, 0  ;;  %s1921_s28 = smov [#allocation6]  }
   0x7   : > { %p2020_p4 = pnand %p1365_p0, %p354_p1  ;;  %s379_s29 = sshll.u32 %s1921_s28, 4  ;;  %s380_s29 = int_to_ptr.vmem [resolvable:$true] %s379_s29 }
   0x8   : > { %s1922_s30 = smov [#allocation9]   ;;  %s1923_s16 = smov [#allocation3]  }
   0x9   : > { %p1690_p5 = pneg %p2020_p4  ;;  %s417_s14 = sshll.u32 %s1922_s30, 4  ;;  %s2026_s14 = int_to_ptr.vmem [resolvable:$true] %s417_s14 }
   0xa   : > { %s366_s17 = sshll.u32 %s1923_s16, 4  ;;  %s1924_s18 = smov [#allocation8]   ;;  %s2034_s17 = int_to_ptr.vmem [resolvable:$true] %s366_s17 }
   0xb   : > { %p2030_p6 = pnand %p1706_p3, %p1690_p5  ;;  %s2036_s19 = sshll.u32 %s1924_s18, 4  ;;  %s405_s19 = int_to_ptr.vmem [resolvable:$true] %s2036_s19 }
   0xc   : > { %s1754_s21 = scalar_lea.vmem %s380_s29, 1024  ;;  %p1762_p11 = scmp.lt.s32.totalorder %s380_s29, %s380_s29 }
   0xd   : > { %p2040_p7 = pneg %p2030_p6  ;;  %p1755_p8 = scmp.ne.s32.totalorder %s380_s29, %s1754_s21 }
   0xe   : > { %p1763_p12 = scmp.lt.s32.totalorder %s1754_s21, %s1754_s21 }
   0xf   : > { %p1757_p9 = pnand %p1755_p8, %p2040_p7 }
  0x10   : > { %p1764_p13 = por %p1763_p12, %p1762_p11 }
  0x11   : > { %p1758_p10 = pneg %p1757_p9 }
  0x13   : > { %p1765_p0 = pnand %p1764_p13, %p1758_p10 }
  0x15   : > { %1768 = shalt.err (!%p1765_p0)
}
  0x16   : > { %s1925_s22 = smov 128   ;;  %s1926_s23 = smov 8  }
  0x17   : > { %1696 = dma.hbm_to_vmem [thread:$0]  (!%p2030_p6), %s2319_s3, 1024, %s380_s29, [#allocation7], %s1925_s22, %s1925_s22, %s1926_s23  }
  0x18   : > { %s1780_s30 = scalar_lea.vmem %s2026_s14, 2048  ;;  %p1788_p9 = scmp.lt.s32.totalorder %s2026_s14, %s2026_s14 }
  0x19   : > { %p1781_p1 = scmp.ne.s32.totalorder %s2026_s14, %s1780_s30  ;;  %p1789_p10 = scmp.lt.s32.totalorder %s1780_s30, %s1780_s30 }
  0x1b   : > { %p1783_p5 = pnand %p1781_p1, %p2040_p7  ;;  %p1790_p11 = por %p1789_p10, %p1788_p9 }
  0x1d   : > { %p1784_p8 = pneg %p1783_p5 }
  0x1f   : > { %p1791_p12 = pnand %p1790_p11, %p1784_p8 }
  0x21   : > { %1794 = shalt.err (!%p1791_p12)
}
  0x22   : > { %1702 = dma.hbm_to_vmem [thread:$0]  (!%p2030_p6), %s2325_s9, 2048, %s2026_s14, [#allocation10], %s1925_s22, %s1925_s22, %s1926_s23  }
  0x23   : > { %s1806_s29 = scalar_lea.vmem %s2034_s17, 1024  ;;  %p1814_p5 = scmp.lt.s32.totalorder %s2034_s17, %s2034_s17 }
  0x24   : > { %p1807_p13 = scmp.ne.s32.totalorder %s2034_s17, %s1806_s29  ;;  %p1815_p8 = scmp.lt.s32.totalorder %s1806_s29, %s1806_s29 }
  0x26   : > { %p1809_p0 = pnand %p1807_p13, %p2040_p7  ;;  %p1816_p9 = por %p1815_p8, %p1814_p5 }
  0x28   : > { %p1810_p1 = pneg %p1809_p0 }
  0x2a   : > { %p1817_p10 = pnand %p1816_p9, %p1810_p1 }
  0x2c   : > { %1820 = shalt.err (!%p1817_p10)
}
  0x2d   : > { %1693 = dma.hbm_to_vmem [thread:$0]  (!%p2030_p6), %s2318_s2, 1024, %s2034_s17, [#allocation4], %s1925_s22, %s1925_s22, %s1926_s23  }
  0x2e   : > { %s1832_s14 = scalar_lea.vmem %s405_s19, 2048  ;;  %p1840_p0 = scmp.lt.s32.totalorder %s405_s19, %s405_s19 }
  0x2f   : > { %p1833_p11 = scmp.ne.s32.totalorder %s405_s19, %s1832_s14  ;;  %p1841_p1 = scmp.lt.s32.totalorder %s1832_s14, %s1832_s14 }
  0x31   : > { %p1835_p12 = pnand %p1833_p11, %p2040_p7  ;;  %p1842_p5 = por %p1841_p1, %p1840_p0 }
  0x33   : > { %p1836_p13 = pneg %p1835_p12 }
  0x35   : > { %p1843_p8 = pnand %p1842_p5, %p1836_p13 }
  0x37   : > { %1846 = shalt.err (!%p1843_p8)
}
  0x38   : > { %1699 = dma.hbm_to_vmem [thread:$0]  (!%p2030_p6), %s2324_s8, 2048, %s405_s19, [#allocation7], %s1925_s22, %s1925_s22, %s1926_s23  }
  0x39   : > { %s1927_s17 = smov [#allocation11]  }
  0x3a   : > { %s433_s16 = sshll.u32 %s1927_s17, 4  ;;  %s434_s16 = int_to_ptr.vmem [resolvable:$true] %s433_s16 }
  0x3b   : > { %s1858_s18 = scalar_lea.vmem %s434_s16, 2048  ;;  %p1866_p12 = scmp.lt.s32.totalorder %s434_s16, %s434_s16 }
  0x3c   : > { %p1859_p9 = scmp.ne.s32.totalorder %s434_s16, %s1858_s18  ;;  %p1867_p13 = scmp.lt.s32.totalorder %s1858_s18, %s1858_s18 }
  0x3e   : > { %p1861_p10 = pnand %p1859_p9, %p2040_p7  ;;  %p1868_p0 = por %p1867_p13, %p1866_p12 }
  0x40   : > { %p1862_p11 = pneg %p1861_p10 }
  0x42   : > { %p1869_p1 = pnand %p1868_p0, %p1862_p11 }
  0x44   : > { %1872 = shalt.err (!%p1869_p1)
}
  0x45   : > { %1705 = dma.hbm_to_vmem [thread:$0]  (!%p2030_p6), %s2327_s11, 2048, %s434_s16, [#allocation10], %s1925_s22, %s1925_s22, %s1926_s23  }
  0x46   : > { %488 = sbr.rel (%p2020_p4) target bundleno = 1262 (0x4ee), region = 72 }
  0x4b   : > { %1902 = dma.done.wait (%p1706_p3), [#allocation4], 1024  }
  0x4c   : > { %1904 = vsyncadd (%p1706_p3), [#allocation4], 4294966272 }
  0x4d   : > { %1906 = dma.done.wait (%p1706_p3), [#allocation7], 3072  }
  0x4e   : > { %1908 = vsyncadd (%p1706_p3), [#allocation7], 4294964224 }
  0x4f   : > { %1910 = dma.done.wait (%p1706_p3), [#allocation10], 4096  }
  0x50   : > { %1912 = vsyncadd (%p1706_p3), [#allocation10], 4294963200  ;;  %590 = sbr.rel (%p1366_p2) target bundleno = 87 (0x57), region = 96 }
  0x55   : > { %v1928_v0 = vmov 0.0  }
  0x56   : > { %591 = vst [vmem:[#allocation2] sm:$0x3] %v1928_v0 }
  0x57 PF: > { %p592_p4 = scmp.ge.s32.totalorder %s2014_s26, 0  ;;  %p593_p6 = scmp.lt.s32.totalorder %s2014_s26, 1 }
  0x59   : > { %p594_p7 = pnand %p593_p6, %p592_p4 }
  0x5a   : > { %s1931_s18 = smov (!%p594_p7), 64  }
  0x5b   : > { %597 = sbr.rel (%p594_p7) target bundleno = 433 (0x1b1), region = 100 }
  0x60   : > { %v598_v1 = vld [vmem:[%s2316_s0] sm:$0xff]  ;;  %v599_v2 = vld [vmem:[%s2316_s0 + $0x8] sm:$0xff]  ;;  %v600_v3 = vld [vmem:[%s2316_s0 + $0x10] sm:$0xf]  ;;  %vm605_vm0 = vcmask 1043456   ;;  %v1929_v13 = vmov 0.0  }
  0x61   : > { %v601_v4 = vld [vmem:[%s2316_s0 + $0x18] sm:$0xff]  ;;  %v602_v5 = vld [vmem:[%s2316_s0 + $0x20] sm:$0xff]  ;;  %v603_v6 = vld [vmem:[%s2316_s0 + $0x28] sm:$0xf]  ;;  %v604_v7 = vadd.f32 %v599_v2, %v598_v1  ;;  %v606_v8 = vsel %vm605_vm0, %v600_v3, 0.0  ;;  %1488 = vmatprep.subr.mxu0 %v1929_v13  ;;  %vm1930_vm1 = vmmov 0  }
  0x62   : > { %v614_v9 = vadd.f32 %v602_v5, %v601_v4  ;;  %v615_v10 = vsel %vm605_vm0, %v603_v6, 0.0  ;;  %v644_v11 = vld [vmem:[#allocation3 + $0x38] sm:$0xff]  ;;  %v643_v14 = vld [vmem:[#allocation3 + $0x30] sm:$0xff]  ;;  %v642_v17 = vld [vmem:[#allocation3 + $0x28] sm:$0xff]  ;;  %1504 = vmatprep.mubr.msk.f32.mxu0 %vm1930_vm1, %v1929_v13  ;;  %vm625_vm2 = vcmask 1041409   ;;  %vm649_vm3 = vcmask 523264  }
  0x63   : > { %v607_v12 = vadd.f32 %v606_v8, %v604_v7  ;;  %1489 = vmatpush3.msra.mxu0 %v644_v11  ;;  %v641_v20 = vld [vmem:[#allocation3 + $0x20] sm:$0xff]  ;;  %v640_v23 = vld [vmem:[#allocation3 + $0x18] sm:$0xff]  ;;  %v639_v26 = vld [vmem:[#allocation3 + $0x10] sm:$0xff] }
  0x64   : > { %v616_v15 = vadd.f32 %v615_v10, %v614_v9  ;;  %1490 = vmatprep.subr.mxu0 %v1929_v13  ;;  %v638_v29 = vld [vmem:[#allocation3 + $0x8] sm:$0xff]  ;;  %v637_v32 = vld [vmem:[#allocation3] sm:$0xff]  ;;  %v636_v41 = vld [vmem:[#allocation2] sm:$0x3] }
  0x65   : > { %v608_v16 = vrot.slane %v607_v12, 4  ;;  %1491 = vmatpush3.msra.mxu0 %v643_v14 }
  0x66   : > { %v617_v18 = vrot.slane %v616_v15, 4  ;;  %1492 = vmatprep.subr.mxu0 %v1929_v13 }
  0x67   : > { %v609_v19 = vadd.f32 %v608_v16, %v607_v12  ;;  %1493 = vmatpush3.msra.mxu0 %v642_v17 }
  0x68   : > { %v618_v21 = vadd.f32 %v617_v18, %v616_v15  ;;  %1494 = vmatprep.subr.mxu0 %v1929_v13 }
  0x69   : > { %v610_v22 = vrot.slane %v609_v19, 2  ;;  %1495 = vmatpush3.msra.mxu0 %v641_v20 }
  0x6a   : > { %v619_v24 = vrot.slane %v618_v21, 2  ;;  %1496 = vmatprep.subr.mxu0 %v1929_v13 }
  0x6b   : > { %v611_v25 = vadd.f32 %v610_v22, %v609_v19  ;;  %1497 = vmatpush3.msra.mxu0 %v640_v23 }
  0x6c   : > { %v620_v27 = vadd.f32 %v619_v24, %v618_v21  ;;  %1498 = vmatprep.subr.mxu0 %v1929_v13 }
  0x6d   : > { %v612_v28 = vrot.slane %v611_v25, 1  ;;  %1499 = vmatpush3.msra.mxu0 %v639_v26 }
  0x6e   : > { %v621_v30 = vrot.slane %v620_v27, 1  ;;  %1500 = vmatprep.subr.mxu0 %v1929_v13 }
  0x6f   : > { %v613_v31 = vadd.f32 %v612_v28, %v611_v25  ;;  %1501 = vmatpush3.msra.mxu0 %v638_v29 }
  0x70   : > { %v622_v33 = vadd.f32 %v621_v30, %v620_v27  ;;  %1502 = vmatprep.subr.mxu0 %v1929_v13 }
  0x71   : > { %1503 = vmatpush3.msra.mxu0 %v637_v32 }
  0x72   : > { %v626_v34 = vsel %vm625_vm2, %v622_v33, %v613_v31 }
  0x73   : > { %628 = vrot.lane.b32.xlu0 %v626_v34, %s1931_s18 }
  0xe5   : > { %v629_v35 = vpop.permute.xlu0 %628 }
  0xe6   : > { %v631_v36 = vrot.slane %v629_v35, 1  ;;  %v634_v38 = vadd.f32 %v629_v35, %v613_v31 }
  0xe8   : > { %v635_v37 = vadd.f32 %v631_v36, %v622_v33 }
  0xea   : > { %v647_v39 = vrot.slane %v635_v37, 7 }
  0xec   : > { %v648_v40 = vsel %vm625_vm2, %v647_v39, %v634_v38 }
  0xed   : > { %1505 = vmatmul.mubr.msk.f32.vlgmr.msra.gmra.mxu0 %vm649_vm3, %v648_v40 }
 0x1ad   : > { %v718_v42 = vpop.f32.mrf.mxu0 }
 0x1ae   : > { %v722_v43 = vadd.f32 %v718_v42, %v636_v41 }
 0x1af   : > { %v1506_v44 = vpop.f32.mrf.mxu0 }
 0x1b0   : > { %723 = vst [vmem:[#allocation2] sm:$0x3] %v722_v43 }
 0x1b1 PF: > { %p724_p2 = scmp.ge.s32.totalorder %s2014_s26, 1  ;;  %p725_p3 = scmp.lt.s32.totalorder %s2014_s26, 2 }
 0x1b3   : > { %p726_p5 = pnand %p725_p3, %p724_p2 }
 0x1b4   : > { %s1934_s17 = smov (!%p726_p5), 64  }
 0x1b5   : > { %729 = sbr.rel (%p726_p5) target bundleno = 779 (0x30b), region = 104 }
 0x1ba   : > { %v730_v45 = vld [vmem:[%s2317_s1] sm:$0xff]  ;;  %v731_v46 = vld [vmem:[%s2317_s1 + $0x8] sm:$0xff]  ;;  %v732_v47 = vld [vmem:[%s2317_s1 + $0x10] sm:$0xf]  ;;  %vm737_vm4 = vcmask 1043456   ;;  %v1932_v57 = vmov 0.0  }
 0x1bb   : > { %v733_v48 = vld [vmem:[%s2317_s1 + $0x18] sm:$0xff]  ;;  %v734_v49 = vld [vmem:[%s2317_s1 + $0x20] sm:$0xff]  ;;  %v735_v50 = vld [vmem:[%s2317_s1 + $0x28] sm:$0xf]  ;;  %v736_v51 = vadd.f32 %v731_v46, %v730_v45  ;;  %v738_v52 = vsel %vm737_vm4, %v732_v47, 0.0  ;;  %1507 = vmatprep.subr.mxu0 %v1932_v57  ;;  %vm1933_vm5 = vmmov 0  }
 0x1bc   : > { %v746_v53 = vadd.f32 %v734_v49, %v733_v48  ;;  %v747_v54 = vsel %vm737_vm4, %v735_v50, 0.0  ;;  %v776_v55 = vld [vmem:[#allocation6 + $0x38] sm:$0xff]  ;;  %v775_v58 = vld [vmem:[#allocation6 + $0x30] sm:$0xff]  ;;  %v774_v61 = vld [vmem:[#allocation6 + $0x28] sm:$0xff]  ;;  %1523 = vmatprep.mubr.msk.f32.mxu0 %vm1933_vm5, %v1932_v57  ;;  %vm757_vm6 = vcmask 1041409   ;;  %vm781_vm7 = vcmask 523264  }
 0x1bd   : > { %v739_v56 = vadd.f32 %v738_v52, %v736_v51  ;;  %1508 = vmatpush3.msra.mxu0 %v776_v55  ;;  %v773_v0 = vld [vmem:[#allocation6 + $0x20] sm:$0xff]  ;;  %v772_v3 = vld [vmem:[#allocation6 + $0x18] sm:$0xff]  ;;  %v771_v6 = vld [vmem:[#allocation6 + $0x10] sm:$0xff] }
 0x1be   : > { %v748_v59 = vadd.f32 %v747_v54, %v746_v53  ;;  %1509 = vmatprep.subr.mxu0 %v1932_v57  ;;  %v770_v9 = vld [vmem:[#allocation6 + $0x8] sm:$0xff]  ;;  %v769_v12 = vld [vmem:[#allocation6] sm:$0xff]  ;;  %v768_v21 = vld [vmem:[#allocation2] sm:$0x3] }
 0x1bf   : > { %v740_v60 = vrot.slane %v739_v56, 4  ;;  %1510 = vmatpush3.msra.mxu0 %v775_v58 }
 0x1c0   : > { %v749_v62 = vrot.slane %v748_v59, 4  ;;  %1511 = vmatprep.subr.mxu0 %v1932_v57 }
 0x1c1   : > { %v741_v63 = vadd.f32 %v740_v60, %v739_v56  ;;  %1512 = vmatpush3.msra.mxu0 %v774_v61 }
 0x1c2   : > { %v750_v1 = vadd.f32 %v749_v62, %v748_v59  ;;  %1513 = vmatprep.subr.mxu0 %v1932_v57 }
 0x1c3   : > { %v742_v2 = vrot.slane %v741_v63, 2  ;;  %1514 = vmatpush3.msra.mxu0 %v773_v0 }
 0x1c4   : > { %v751_v4 = vrot.slane %v750_v1, 2  ;;  %1515 = vmatprep.subr.mxu0 %v1932_v57 }
 0x1c5   : > { %v743_v5 = vadd.f32 %v742_v2, %v741_v63  ;;  %1516 = vmatpush3.msra.mxu0 %v772_v3 }
 0x1c6   : > { %v752_v7 = vadd.f32 %v751_v4, %v750_v1  ;;  %1517 = vmatprep.subr.mxu0 %v1932_v57 }
 0x1c7   : > { %v744_v8 = vrot.slane %v743_v5, 1  ;;  %1518 = vmatpush3.msra.mxu0 %v771_v6 }
 0x1c8   : > { %v753_v10 = vrot.slane %v752_v7, 1  ;;  %1519 = vmatprep.subr.mxu0 %v1932_v57 }
 0x1c9   : > { %v745_v11 = vadd.f32 %v744_v8, %v743_v5  ;;  %1520 = vmatpush3.msra.mxu0 %v770_v9 }
 0x1ca   : > { %v754_v13 = vadd.f32 %v753_v10, %v752_v7  ;;  %1521 = vmatprep.subr.mxu0 %v1932_v57 }
 0x1cb   : > { %1522 = vmatpush3.msra.mxu0 %v769_v12 }
 0x1cc   : > { %v758_v14 = vsel %vm757_vm6, %v754_v13, %v745_v11 }
 0x1cd   : > { %760 = vrot.lane.b32.xlu0 %v758_v14, %s1934_s17 }
 0x23f   : > { %v761_v15 = vpop.permute.xlu0 %760 }
 0x240   : > { %v763_v16 = vrot.slane %v761_v15, 1  ;;  %v766_v18 = vadd.f32 %v761_v15, %v745_v11 }
 0x242   : > { %v767_v17 = vadd.f32 %v763_v16, %v754_v13 }
 0x244   : > { %v779_v19 = vrot.slane %v767_v17, 7 }
 0x246   : > { %v780_v20 = vsel %vm757_vm6, %v779_v19, %v766_v18 }
 0x247   : > { %1524 = vmatmul.mubr.msk.f32.vlgmr.msra.gmra.mxu0 %vm781_vm7, %v780_v20 }
 0x307   : > { %v850_v22 = vpop.f32.mrf.mxu0 }
 0x308   : > { %v854_v23 = vadd.f32 %v850_v22, %v768_v21 }
 0x309   : > { %v1525_v24 = vpop.f32.mrf.mxu0 }
 0x30a   : > { %855 = vst [vmem:[#allocation2] sm:$0x3] %v854_v23 }
 0x30b PF: > { %p1394_p8 = scmp.ne.s32.totalorder %s2014_s26, 1 }
 0x30d   : > { %859 = sbr.rel (%p1394_p8) target bundleno = 1247 (0x4df), region = 108 }
 0x312   : > { %v903_v25 = vld [vmem:[#allocation8 + $0x78] sm:$0xff]  ;;  %v1935_v27 = vmov 0.0   ;;  %v902_v28 = vld [vmem:[#allocation8 + $0x70] sm:$0xff]  ;;  %v901_v30 = vld [vmem:[#allocation8 + $0x68] sm:$0xff]  ;;  %vm1936_vm8 = vmmov 0  }
 0x313   : > { %v886_v26 = vld [vmem:[%s2323_s7 + $0x78] sm:$0xff]  ;;  %1526 = vmatprep.subr.mxu0 %v1935_v27  ;;  %1561 = vmatprep.subr.mxu1 %v1935_v27  ;;  %v885_v29 = vld [vmem:[%s2323_s7 + $0x70] sm:$0xff]  ;;  %v884_v31 = vld [vmem:[%s2323_s7 + $0x68] sm:$0xff] }
 0x314   : > { %1527 = vmatpush3.msra.mxu0 %v903_v25  ;;  %1562 = vmatpush3.msra.mxu1 %v886_v26  ;;  %v900_v32 = vld [vmem:[#allocation8 + $0x60] sm:$0xff]  ;;  %v899_v34 = vld [vmem:[#allocation8 + $0x58] sm:$0xff]  ;;  %v898_v36 = vld [vmem:[#allocation8 + $0x50] sm:$0xff] }
 0x315   : > { %1528 = vmatprep.subr.mxu0 %v1935_v27  ;;  %1563 = vmatprep.subr.mxu1 %v1935_v27  ;;  %v883_v33 = vld [vmem:[%s2323_s7 + $0x60] sm:$0xff]  ;;  %v882_v35 = vld [vmem:[%s2323_s7 + $0x58] sm:$0xff]  ;;  %v881_v37 = vld [vmem:[%s2323_s7 + $0x50] sm:$0xff] }
 0x316   : > { %1529 = vmatpush3.msra.mxu0 %v902_v28  ;;  %1564 = vmatpush3.msra.mxu1 %v885_v29  ;;  %v897_v38 = vld [vmem:[#allocation8 + $0x48] sm:$0xff]  ;;  %v896_v40 = vld [vmem:[#allocation8 + $0x40] sm:$0xff]  ;;  %v895_v42 = vld [vmem:[#allocation8 + $0x38] sm:$0xff] }
 0x317   : > { %1530 = vmatprep.subr.mxu0 %v1935_v27  ;;  %1565 = vmatprep.subr.mxu1 %v1935_v27  ;;  %v880_v39 = vld [vmem:[%s2323_s7 + $0x48] sm:$0xff]  ;;  %v879_v41 = vld [vmem:[%s2323_s7 + $0x40] sm:$0xff]  ;;  %v878_v43 = vld [vmem:[%s2323_s7 + $0x38] sm:$0xff] }
 0x318   : > { %1531 = vmatpush3.msra.mxu0 %v901_v30  ;;  %1566 = vmatpush3.msra.mxu1 %v884_v31  ;;  %v894_v44 = vld [vmem:[#allocation8 + $0x30] sm:$0xff]  ;;  %v893_v46 = vld [vmem:[#allocation8 + $0x28] sm:$0xff]  ;;  %v892_v48 = vld [vmem:[#allocation8 + $0x20] sm:$0xff] }
 0x319   : > { %1532 = vmatprep.subr.mxu0 %v1935_v27  ;;  %1567 = vmatprep.subr.mxu1 %v1935_v27  ;;  %v877_v45 = vld [vmem:[%s2323_s7 + $0x30] sm:$0xff]  ;;  %v876_v47 = vld [vmem:[%s2323_s7 + $0x28] sm:$0xff]  ;;  %v875_v49 = vld [vmem:[%s2323_s7 + $0x20] sm:$0xff] }
 0x31a   : > { %1533 = vmatpush3.msra.mxu0 %v900_v32  ;;  %1568 = vmatpush3.msra.mxu1 %v883_v33  ;;  %v891_v50 = vld [vmem:[#allocation8 + $0x18] sm:$0xff]  ;;  %v890_v52 = vld [vmem:[#allocation8 + $0x10] sm:$0xff]  ;;  %v889_v54 = vld [vmem:[#allocation8 + $0x8] sm:$0xff] }
 0x31b   : > { %1534 = vmatprep.subr.mxu0 %v1935_v27  ;;  %1569 = vmatprep.subr.mxu1 %v1935_v27  ;;  %v874_v51 = vld [vmem:[%s2323_s7 + $0x18] sm:$0xff]  ;;  %v873_v53 = vld [vmem:[%s2323_s7 + $0x10] sm:$0xff]  ;;  %v872_v55 = vld [vmem:[%s2323_s7 + $0x8] sm:$0xff] }
 0x31c   : > { %1535 = vmatpush3.msra.mxu0 %v899_v34  ;;  %1570 = vmatpush3.msra.mxu1 %v882_v35  ;;  %v888_v56 = vld [vmem:[#allocation8] sm:$0xff]  ;;  %v887_v57 = vld [vmem:[%s2321_s5] sm:$0x3]  ;;  %v1058_v61 = vld [vmem:[#allocation9 + $0x70] sm:$0xff] }
 0x31d   : > { %1536 = vmatprep.subr.mxu0 %v1935_v27  ;;  %1571 = vmatprep.subr.mxu1 %v1935_v27  ;;  %v871_v58 = vld [vmem:[%s2323_s7] sm:$0xff]  ;;  %v1057_v62 = vld [vmem:[#allocation9 + $0x68] sm:$0xff]  ;;  %v1054_v1 = vld [vmem:[#allocation9 + $0x50] sm:$0xff] }
 0x31e   : > { %1537 = vmatpush3.msra.mxu0 %v898_v36  ;;  %1572 = vmatpush3.msra.mxu1 %v881_v37  ;;  %v870_v59 = vld [vmem:[%s2320_s4] sm:$0x3]  ;;  %v1056_v63 = vld [vmem:[#allocation9 + $0x60] sm:$0xff]  ;;  %v1053_v2 = vld [vmem:[#allocation9 + $0x48] sm:$0xff] }
 0x31f   : > { %1538 = vmatprep.subr.mxu0 %v1935_v27  ;;  %1573 = vmatprep.subr.mxu1 %v1935_v27  ;;  %v1059_v60 = vld [vmem:[#allocation9 + $0x78] sm:$0xff]  ;;  %v1052_v3 = vld [vmem:[#allocation9 + $0x40] sm:$0xff]  ;;  %v1050_v5 = vld [vmem:[#allocation9 + $0x30] sm:$0xff] }
 0x320   : > { %1539 = vmatpush3.msra.mxu0 %v897_v38  ;;  %1574 = vmatpush3.msra.mxu1 %v880_v39  ;;  %v1055_v0 = vld [vmem:[#allocation9 + $0x58] sm:$0xff]  ;;  %v1049_v6 = vld [vmem:[#allocation9 + $0x28] sm:$0xff]  ;;  %v1048_v7 = vld [vmem:[#allocation9 + $0x20] sm:$0xff] }
 0x321   : > { %1540 = vmatprep.subr.mxu0 %v1935_v27  ;;  %1575 = vmatprep.subr.mxu1 %v1935_v27  ;;  %v1051_v4 = vld [vmem:[#allocation9 + $0x38] sm:$0xff]  ;;  %v1046_v11 = vld [vmem:[#allocation9 + $0x10] sm:$0xff]  ;;  %v1045_v13 = vld [vmem:[#allocation9 + $0x8] sm:$0xff] }
 0x322   : > { %1541 = vmatpush3.msra.mxu0 %v896_v40  ;;  %1576 = vmatpush3.msra.mxu1 %v879_v41  ;;  %v860_v8 = vld [vmem:[#allocation2] sm:$0x3]  ;;  %v1044_v14 = vld [vmem:[#allocation9] sm:$0xff]  ;;  %v1154_v17 = vld [vmem:[#allocation11 + $0x70] sm:$0xff] }
 0x323   : > { %1542 = vmatprep.subr.mxu0 %v1935_v27  ;;  %1577 = vmatprep.subr.mxu1 %v1935_v27  ;;  %v1395_v9 = vld [vmem:[%s2322_s6] ss:$0 sm:$0xff]  ;;  %v1153_v18 = vld [vmem:[#allocation11 + $0x68] sm:$0xff]  ;;  %v1152_v19 = vld [vmem:[#allocation11 + $0x60] sm:$0xff] }
 0x324   : > { %1543 = vmatpush3.msra.mxu0 %v895_v42  ;;  %1578 = vmatpush3.msra.mxu1 %v878_v43  ;;  %v1047_v10 = vld [vmem:[#allocation9 + $0x18] sm:$0xff]  ;;  %v868_v12 = vadd.f32 %v1395_v9, %v860_v8  ;;  %v1150_v21 = vld [vmem:[#allocation11 + $0x50] sm:$0xff]  ;;  %v1149_v22 = vld [vmem:[#allocation11 + $0x48] sm:$0xff] }
 0x325   : > { %1544 = vmatprep.subr.mxu0 %v1935_v27  ;;  %1579 = vmatprep.subr.mxu1 %v1935_v27  ;;  %v1155_v16 = vld [vmem:[#allocation11 + $0x78] sm:$0xff]  ;;  %v1148_v23 = vld [vmem:[#allocation11 + $0x40] sm:$0xff]  ;;  %v1146_v25 = vld [vmem:[#allocation11 + $0x30] sm:$0xff] }
 0x326   : > { %1545 = vmatpush3.msra.mxu0 %v894_v44  ;;  %1580 = vmatpush3.msra.mxu1 %v877_v45  ;;  %v869_v15 = vmul.f32 0.0125, %v868_v12  ;;  %v1151_v20 = vld [vmem:[#allocation11 + $0x58] sm:$0xff]  ;;  %v1145_v26 = vld [vmem:[#allocation11 + $0x28] sm:$0xff]  ;;  %v1144_v28 = vld [vmem:[#allocation11 + $0x20] sm:$0xff] }
 0x327   : > { %1546 = vmatprep.subr.mxu0 %v1935_v27  ;;  %1581 = vmatprep.subr.mxu1 %v1935_v27  ;;  %v1147_v24 = vld [vmem:[#allocation11 + $0x38] sm:$0xff]  ;;  %v1142_v30 = vld [vmem:[#allocation11 + $0x10] sm:$0xff]  ;;  %v1141_v31 = vld [vmem:[#allocation11 + $0x8] sm:$0xff] }
 0x328   : > { %1547 = vmatpush3.msra.mxu0 %v893_v46  ;;  %1582 = vmatpush3.msra.mxu1 %v876_v47  ;;  %v1143_v29 = vld [vmem:[#allocation11 + $0x18] sm:$0xff]  ;;  %v1140_v32 = vld [vmem:[#allocation11] sm:$0xff] }
 0x329   : > { %1548 = vmatprep.subr.mxu0 %v1935_v27  ;;  %1583 = vmatprep.subr.mxu1 %v1935_v27  ;;  %v1396_v39 = vld [vmem:[%s2326_s10] ss:$0 sm:$0xff] }
 0x32a   : > { %1549 = vmatpush3.msra.mxu0 %v892_v48  ;;  %1584 = vmatpush3.msra.mxu1 %v875_v49 }
 0x32b   : > { %1550 = vmatprep.subr.mxu0 %v1935_v27  ;;  %1585 = vmatprep.subr.mxu1 %v1935_v27 }
 0x32c   : > { %1551 = vmatpush3.msra.mxu0 %v891_v50  ;;  %1586 = vmatpush3.msra.mxu1 %v874_v51 }
 0x32d   : > { %1552 = vmatprep.subr.mxu0 %v1935_v27  ;;  %1587 = vmatprep.subr.mxu1 %v1935_v27 }
 0x32e   : > { %1553 = vmatpush3.msra.mxu0 %v890_v52  ;;  %1588 = vmatpush3.msra.mxu1 %v873_v53 }
 0x32f   : > { %1554 = vmatprep.subr.mxu0 %v1935_v27  ;;  %1589 = vmatprep.subr.mxu1 %v1935_v27 }
 0x330   : > { %1555 = vmatpush3.msra.mxu0 %v889_v54  ;;  %1590 = vmatpush3.msra.mxu1 %v872_v55 }
 0x331   : > { %1556 = vmatprep.subr.mxu0 %v1935_v27  ;;  %1558 = vmatprep.mubr.msk.f32.mxu0 %vm1936_vm8, %v1935_v27 }
 0x332   : > { %1557 = vmatpush3.msra.mxu0 %v888_v56  ;;  %1591 = vmatprep.subr.mxu1 %v1935_v27 }
 0x333   : > { %1559 = vmatmul.mubr.f32.vlgmr.msra.gmra.mxu0 %v887_v57  ;;  %1592 = vmatpush3.msra.mxu1 %v871_v58 }
 0x334   : > { %1593 = vmatprep.mubr.msk.f32.mxu1 %vm1936_vm8, %v1935_v27  ;;  %1596 = vmatprep.subr.mxu0 %v1935_v27 }
 0x335   : > { %1594 = vmatmul.mubr.f32.vlgmr.msra.gmra.mxu1 %v870_v59  ;;  %1597 = vmatpush3.msra.mxu0 %v1059_v60 }
 0x336   : > { %1598 = vmatprep.subr.mxu0 %v1935_v27  ;;  %1628 = vmatprep.mubr.msk.f32.mxu0 %vm1936_vm8, %v1935_v27 }
 0x337   : > { %1599 = vmatpush3.msra.mxu0 %v1058_v61  ;;  %1631 = vmatprep.subr.mxu1 %v1935_v27 }
 0x338   : > { %1600 = vmatprep.subr.mxu0 %v1935_v27  ;;  %1663 = vmatprep.mubr.msk.f32.mxu1 %vm1936_vm8, %v1935_v27 }
 0x339   : > { %1601 = vmatpush3.msra.mxu0 %v1057_v62  ;;  %1632 = vmatpush3.msra.mxu1 %v1155_v16 }
 0x33a   : > { %1602 = vmatprep.subr.mxu0 %v1935_v27  ;;  %1633 = vmatprep.subr.mxu1 %v1935_v27 }
 0x33b   : > { %1603 = vmatpush3.msra.mxu0 %v1056_v63  ;;  %1634 = vmatpush3.msra.mxu1 %v1154_v17 }
 0x33c   : > { %1604 = vmatprep.subr.mxu0 %v1935_v27  ;;  %1635 = vmatprep.subr.mxu1 %v1935_v27 }
 0x33d   : > { %1605 = vmatpush3.msra.mxu0 %v1055_v0  ;;  %1636 = vmatpush3.msra.mxu1 %v1153_v18 }
 0x33e   : > { %1606 = vmatprep.subr.mxu0 %v1935_v27  ;;  %1637 = vmatprep.subr.mxu1 %v1935_v27 }
 0x33f   : > { %1607 = vmatpush3.msra.mxu0 %v1054_v1  ;;  %1638 = vmatpush3.msra.mxu1 %v1152_v19 }
 0x340   : > { %1608 = vmatprep.subr.mxu0 %v1935_v27  ;;  %1639 = vmatprep.subr.mxu1 %v1935_v27 }
 0x341   : > { %1609 = vmatpush3.msra.mxu0 %v1053_v2  ;;  %1640 = vmatpush3.msra.mxu1 %v1151_v20 }
 0x342   : > { %1610 = vmatprep.subr.mxu0 %v1935_v27  ;;  %1641 = vmatprep.subr.mxu1 %v1935_v27 }
 0x343   : > { %1611 = vmatpush3.msra.mxu0 %v1052_v3  ;;  %1642 = vmatpush3.msra.mxu1 %v1150_v21 }
 0x344   : > { %1612 = vmatprep.subr.mxu0 %v1935_v27  ;;  %1643 = vmatprep.subr.mxu1 %v1935_v27 }
 0x345   : > { %1613 = vmatpush3.msra.mxu0 %v1051_v4  ;;  %1644 = vmatpush3.msra.mxu1 %v1149_v22 }
 0x346   : > { %1614 = vmatprep.subr.mxu0 %v1935_v27  ;;  %1645 = vmatprep.subr.mxu1 %v1935_v27 }
 0x347   : > { %1615 = vmatpush3.msra.mxu0 %v1050_v5  ;;  %1646 = vmatpush3.msra.mxu1 %v1148_v23 }
 0x348   : > { %1616 = vmatprep.subr.mxu0 %v1935_v27  ;;  %1647 = vmatprep.subr.mxu1 %v1935_v27 }
 0x349   : > { %1617 = vmatpush3.msra.mxu0 %v1049_v6  ;;  %1648 = vmatpush3.msra.mxu1 %v1147_v24 }
 0x34a   : > { %1618 = vmatprep.subr.mxu0 %v1935_v27  ;;  %1649 = vmatprep.subr.mxu1 %v1935_v27 }
 0x34b   : > { %1619 = vmatpush3.msra.mxu0 %v1048_v7  ;;  %1650 = vmatpush3.msra.mxu1 %v1146_v25 }
 0x34c   : > { %1620 = vmatprep.subr.mxu0 %v1935_v27  ;;  %1651 = vmatprep.subr.mxu1 %v1935_v27 }
 0x34d   : > { %1621 = vmatpush3.msra.mxu0 %v1047_v10  ;;  %1652 = vmatpush3.msra.mxu1 %v1145_v26 }
 0x34e   : > { %1622 = vmatprep.subr.mxu0 %v1935_v27  ;;  %1653 = vmatprep.subr.mxu1 %v1935_v27 }
 0x34f   : > { %1623 = vmatpush3.msra.mxu0 %v1046_v11  ;;  %1654 = vmatpush3.msra.mxu1 %v1144_v28 }
 0x350   : > { %1624 = vmatprep.subr.mxu0 %v1935_v27  ;;  %1655 = vmatprep.subr.mxu1 %v1935_v27 }
 0x351   : > { %1625 = vmatpush3.msra.mxu0 %v1045_v13  ;;  %1656 = vmatpush3.msra.mxu1 %v1143_v29 }
 0x352   : > { %1626 = vmatprep.subr.mxu0 %v1935_v27  ;;  %1657 = vmatprep.subr.mxu1 %v1935_v27 }
 0x353   : > { %1627 = vmatpush3.msra.mxu0 %v1044_v14  ;;  %1658 = vmatpush3.msra.mxu1 %v1142_v30 }
 0x354   : > { %1629 = vmatmul.mubr.f32.vlgmr.msra.gmra.mxu0 %v869_v15  ;;  %1659 = vmatprep.subr.mxu1 %v1935_v27 }
 0x355   : > { %1660 = vmatpush3.msra.mxu1 %v1141_v31 }
 0x356   : > { %1661 = vmatprep.subr.mxu1 %v1935_v27  ;;  %v1397_v27 = vld [vmem:[%s2328_s12] ss:$0 sm:$0xff] }
 0x357   : > { %1662 = vmatpush3.msra.mxu1 %v1140_v32 }
 0x3f3   : > { %v970_v33 = vpop.f32.mrf.mxu0 }
 0x3f5   : > { %v1040_v34 = vpop.f32.mrf.mxu1  ;;  %v1560_v35 = vpop.f32.mrf.mxu0 }
 0x3f6   : > { %v1041_v37 = vadd.f32 %v1040_v34, %v970_v33 }
 0x3f7   : > { %v1595_v36 = vpop.f32.mrf.mxu1 }
 0x414   : > { %v1126_v38 = vpop.f32.mrf.mxu0 }
 0x415   : > { %v1130_v40 = vadd.f32 %v1126_v38, %v1041_v37 }
 0x416   : > { %v1630_v41 = vpop.f32.mrf.mxu0 }
 0x417   : > { %v1138_v42 = vadd.f32 %v1396_v39, %v1130_v40 }
 0x419   : > { %v1139_v43 = vmax.f32 %v1138_v42, 0.0 }
 0x41b   : > { %1664 = vmatmul.mubr.f32.vlgmr.msra.gmra.mxu1 %v1139_v43 }
 0x4db   : > { %v1229_v44 = vpop.f32.mrf.mxu1 }
 0x4dc   : > { %v1230_v45 = vadd.f32 %v1397_v27, %v1229_v44 }
 0x4dd   : > { %v1665_v46 = vpop.f32.mrf.mxu1 }
 0x4de   : > { %1233 = vst [vmem:[#allocation12] sm:$0x3] %v1230_v45 }
 0x4df PF: > { %p1716_p9 = scmp.eq.s32.totalorder %s2014_s26, 1  ;;  %s1937_s28 = smov [#allocation12]  }
 0x4e0   : > { %s1241_s30 = sshll.u32 %s1937_s28, 4  ;;  %s1242_s30 = int_to_ptr.vmem [resolvable:$true] %s1241_s30 }
 0x4e1   : > { %s1873_s17 = scalar_lea.vmem %s1242_s30, 32  ;;  %p1880_p13 = scmp.lt.s32.totalorder %s1242_s30, %s1242_s30 }
 0x4e2   : > { %p1874_p10 = scmp.ne.s32.totalorder %s1242_s30, %s1873_s17  ;;  %p1881_p0 = scmp.lt.s32.totalorder %s1873_s17, %s1873_s17 }
 0x4e4   : > { %p1875_p11 = pnand %p1874_p10, %p1716_p9  ;;  %p1882_p1 = por %p1881_p0, %p1880_p13 }
 0x4e6   : > { %p1876_p12 = pneg %p1875_p11 }
 0x4e8   : > { %p1883_p4 = pnand %p1882_p1, %p1876_p12 }
 0x4ea   : > { %1886 = shalt.err (!%p1883_p4)
}
 0x4eb   : > { %1687 = dma.vmem_to_hbm [thread:$0]  (%p1716_p9), %s1242_s30, 32, %s2329_s13, [#allocation5]  }
 0x4ec   : > { %1914 = dma.done.wait (%p1716_p9), [#allocation5], 32  }
 0x4ed   : > { %1916 = vsyncadd (%p1716_p9), [#allocation5], 4294967264 }
 0x4ee PF: > { %s27_s25 = sadd.s32 1, %s1919_s25  }
 0x4ef   : > { %p24_p6 = scmp.ge.s32.totalorder %s27_s25, 4  }
 0x4f1   :  { %26 = sbr.rel (!%p24_p6) target bundleno = 4 (0x4), region = 139 }
 0x4f6   :  { %1254 = vsyncpa [#allocation4], 1 }
 0x4f7   :  { %1256 = vsyncpa [#allocation4 + $0x1], 1 }
 0x4f8   :  { %1257 = vsyncpa [#allocation7], 1 }
 0x4f9   :  { %1258 = vsyncpa [#allocation10], 1 }
 0x4fa   :  { %1259 = vsyncpa [#allocation5], 1 }
 0x4fb   :  { %1261 = vsyncpa [#allocation5 + $0x1], 1 }

</bundles_post_ra>
